<compile_context>
chip_gen: v7x
topology: tpu7x:2x2x1
jax: 0.10.0
libtpu: 0.0.40
codegen_flags: <defaults>
</compile_context>

<pallas_src>
import functools

import jax
import jax.numpy as jnp
from jax.experimental import pallas as pl
from jax.experimental.pallas import tpu as pltpu

# LIF parameters (the `param` tuple of the module), fixed deterministically.
VDECAY = 0.5
VTH = 0.5
GRAD_WIN = 0.5      # backward-only (surrogate gradient window)
GRAD_AMP = 1.0      # backward-only (surrogate gradient amplitude)
RATE_SCALE = 1.0    # backward-only (rate scaling of surrogate gradient)


def _lif_kernel(x_ref, w_ref, b_ref, pre_spk_ref, pre_volt_ref,
                spk_ref, volt_ref, *, vdecay, vth):
    # psp_func hot path: one full-K matmul on the MXU, f32 accumulation, +bias.
    psp = jnp.dot(x_ref[...], w_ref[...],
                  preferred_element_type=jnp.float32) + b_ref[...]
    # LIF membrane update with spike-driven reset of the previous potential.
    volt = pre_volt_ref[...] * vdecay * (1.0 - pre_spk_ref[...]) + psp
    # pseudo_grad_ops forward: hard threshold.
    spk_ref[...] = (volt > vth).astype(spk_ref.dtype)
    volt_ref[...] = volt.astype(volt_ref.dtype)


def lif_neurons_forward(x, weight, bias, pre_spike, pre_volt, *,
                        vdecay=VDECAY, vth=VTH,
                        block_b=256, block_h=512,
                        compute_dtype=jnp.bfloat16):
    """Fused psp (Linear) + LIF membrane update + threshold.

    x:         [B, D_in]
    weight:    [D_in, H]   (pre-transposed vs torch's [H, D_in])
    bias:      [H]
    pre_spike: [B, H]
    pre_volt:  [B, H]
    """
    B, Din = x.shape
    H = weight.shape[1]

    # Single full-extent K tile; M / N tiles as large as reasonable so the
    # MXU sees big operands and per-grid-step overhead is amortized.
    tm = B if B <= block_b else block_b
    tn = H if H <= block_h else block_h
    assert B % tm == 0 and H % tn == 0, "pad B / H to tile multiples"

    # bf16 operands: full-rate MXU on v6e/v7x and half the operand DMA bytes.
    x_c = x.astype(compute_dtype)
    w_c = weight.astype(compute_dtype)
    bias2d = bias.reshape(1, H).astype(jnp.float32)

    kernel = functools.partial(_lif_kernel, vdecay=vdecay, vth=vth)

    spike, volt = pl.pallas_call(
        kernel,
        out_shape=(jax.ShapeDtypeStruct((B, H), jnp.float32),   # spike
                   jax.ShapeDtypeStruct((B, H), jnp.float32)),  # volt
        grid_spec=pltpu.PrefetchScalarGridSpec(
            num_scalar_prefetch=0,
            grid=(B // tm, H // tn),
            in_specs=[
                pl.BlockSpec((tm, Din), lambda i, j: (i, 0)),   # x
                pl.BlockSpec((Din, tn), lambda i, j: (0, j)),   # weight
                pl.BlockSpec((1, tn), lambda i, j: (0, j)),     # bias
                pl.BlockSpec((tm, tn), lambda i, j: (i, j)),    # pre_spike
                pl.BlockSpec((tm, tn), lambda i, j: (i, j)),    # pre_volt
            ],
            out_specs=[
                pl.BlockSpec((tm, tn), lambda i, j: (i, j)),    # spike out
                pl.BlockSpec((tm, tn), lambda i, j: (i, j)),    # volt out
            ],
        ),
        # In-place recurrent state update: pre_spike -> spike, pre_volt -> volt.
        input_output_aliases={3: 0, 4: 1},
        compiler_params=pltpu.CompilerParams(
            dimension_semantics=("parallel", "parallel")),
    )(x_c, w_c, bias2d, pre_spike, pre_volt)

    # Module returns (output, (output, volt))
    return spike, (spike, volt)


def _reference(x, weight, bias, pre_spike, pre_volt,
               compute_dtype=jnp.bfloat16):
    # Pure-JAX reference with the same bf16 operand cast as the kernel.
    psp = jnp.dot(x.astype(compute_dtype), weight.astype(compute_dtype),
                  preferred_element_type=jnp.float32) + bias[None, :]
    volt = pre_volt * VDECAY * (1.0 - pre_spike) + psp
    spike = (volt > VTH).astype(jnp.float32)
    return spike, (spike, volt)


if __name__ == "__main__":
    key = jax.random.PRNGKey(0)
    k_x, k_w, k_b, k_s, k_v = jax.random.split(key, 5)

    B, Din, H = 16, 256, 128
    x = jax.random.normal(k_x, (B, Din), dtype=jnp.float32)
    # Deterministic synthetic parameters for psp_func (nn.Linear(Din, H)).
    weight = jax.random.normal(k_w, (Din, H), dtype=jnp.float32) * (1.0 / Din ** 0.5)
    bias = jax.random.normal(k_b, (H,), dtype=jnp.float32) * 0.01
    # Previous state: binary spikes and membrane voltages.
    pre_spike = (jax.random.uniform(k_s, (B, H)) > 0.7).astype(jnp.float32)
    pre_volt = jax.random.normal(k_v, (B, H), dtype=jnp.float32) * 0.3

    # Reference first (the kernel aliases the state buffers in place).
    ref_out, (_, ref_volt) = _reference(x, weight, bias, pre_spike, pre_volt)

    fwd = jax.jit(lif_neurons_forward)
    out, (out_state, volt) = fwd(x, weight, bias, pre_spike, pre_volt)
    jax.block_until_ready((out, out_state, volt))

    # Membrane potential matches the bf16-operand reference.
    assert jnp.allclose(volt, ref_volt, atol=1e-2, rtol=1e-2)
    # Spikes are exactly the threshold of the kernel's own volt ...
    assert jnp.array_equal(out, (volt > VTH).astype(jnp.float32))
    assert jnp.array_equal(out, out_state)
    # ... and match the reference spikes away from the threshold boundary
    # (where bf16 accumulation-order differences could legitimately flip a bit).
    near_thresh = jnp.abs(ref_volt - VTH) < 1e-2
    assert bool(jnp.all((out == ref_out) | near_thresh))

    print("KERNEL_OK")
</pallas_src>

<mosaic_0001>
module attributes {stable_mosaic.version = 11 : i64} {
  func.func @_lif_kernel(%arg0: i32, %arg1: i32, %arg2: memref<16x256xbf16, #tpu.memory_space<vmem>>, %arg3: memref<256x128xbf16, #tpu.memory_space<vmem>>, %arg4: memref<1x128xf32, #tpu.memory_space<vmem>>, %arg5: memref<16x128xf32, #tpu.memory_space<vmem>>, %arg6: memref<16x128xf32, #tpu.memory_space<vmem>>, %arg7: memref<16x128xf32, #tpu.memory_space<vmem>>, %arg8: memref<16x128xf32, #tpu.memory_space<vmem>>) attributes {dimension_semantics = [#tpu.dimension_semantics<parallel>, #tpu.dimension_semantics<parallel>], iteration_bounds = array<i64: 1, 1>, scalar_prefetch = 0 : i64, scratch_operands = 0 : i64, tpu.core_type = #tpu.core_type<tc>, window_params = [{transform_indices = @transform_0, window_bounds = array<i64: 16, 256>}, {transform_indices = @transform_1, window_bounds = array<i64: 256, 128>}, {transform_indices = @transform_2, window_bounds = array<i64: 1, 128>}, {transform_indices = @transform_3, window_bounds = array<i64: 16, 128>}, {transform_indices = @transform_4, window_bounds = array<i64: 16, 128>}, {transform_indices = @transform_5, window_bounds = array<i64: 16, 128>}, {transform_indices = @transform_6, window_bounds = array<i64: 16, 128>}]} {
    %c0 = arith.constant 0 : index
    %c0_0 = arith.constant 0 : index
    %0 = vector.load %arg2[%c0, %c0_0] : memref<16x256xbf16, #tpu.memory_space<vmem>>, vector<16x256xbf16>
    %c0_1 = arith.constant 0 : index
    %c0_2 = arith.constant 0 : index
    %1 = vector.load %arg3[%c0_1, %c0_2] : memref<256x128xbf16, #tpu.memory_space<vmem>>, vector<256x128xbf16>
    %cst = arith.constant dense<0.000000e+00> : vector<16x128xf32>
    %2 = tpu.matmul %0, %1, %cst {dimension_numbers = #tpu.dot_dimension_numbers<[1], [0], [0], [1], [0, 0, 1, 1], [], []>} : vector<16x256xbf16>, vector<256x128xbf16>, vector<16x128xf32> -> vector<16x128xf32>
    %c0_3 = arith.constant 0 : index
    %c0_4 = arith.constant 0 : index
    %3 = vector.load %arg4[%c0_3, %c0_4] : memref<1x128xf32, #tpu.memory_space<vmem>>, vector<1x128xf32>
    %4 = vector.broadcast %3 : vector<1x128xf32> to vector<16x128xf32>
    %5 = arith.addf %2, %4 : vector<16x128xf32>
    %c0_5 = arith.constant 0 : index
    %c0_6 = arith.constant 0 : index
    %6 = vector.load %arg6[%c0_5, %c0_6] : memref<16x128xf32, #tpu.memory_space<vmem>>, vector<16x128xf32>
    %cst_7 = arith.constant 5.000000e-01 : f32
    %7 = vector.broadcast %cst_7 : f32 to vector<16x128xf32>
    %8 = arith.mulf %6, %7 : vector<16x128xf32>
    %c0_8 = arith.constant 0 : index
    %c0_9 = arith.constant 0 : index
    %9 = vector.load %arg5[%c0_8, %c0_9] : memref<16x128xf32, #tpu.memory_space<vmem>>, vector<16x128xf32>
    %cst_10 = arith.constant 1.000000e+00 : f32
    %10 = vector.broadcast %cst_10 : f32 to vector<16x128xf32>
    %11 = arith.subf %10, %9 : vector<16x128xf32>
    %12 = arith.mulf %8, %11 : vector<16x128xf32>
    %13 = arith.addf %12, %5 : vector<16x128xf32>
    %cst_11 = arith.constant 5.000000e-01 : f32
    %14 = vector.broadcast %cst_11 : f32 to vector<16x128xf32>
    %15 = arith.cmpf ogt, %13, %14 : vector<16x128xf32>
    %16 = arith.extui %15 : vector<16x128xi1> to vector<16x128xi32>
    %17 = arith.sitofp %16 : vector<16x128xi32> to vector<16x128xf32>
    %c0_12 = arith.constant 0 : index
    %c0_13 = arith.constant 0 : index
    %18 = vector.load %arg7[%c0_12, %c0_13] : memref<16x128xf32, #tpu.memory_space<vmem>>, vector<16x128xf32>
    tpu.vector_store %arg7[%c0_12, %c0_13], %17 {strides = array<i32>} : memref<16x128xf32, #tpu.memory_space<vmem>>, vector<16x128xf32>,
    %c0_14 = arith.constant 0 : index
    %c0_15 = arith.constant 0 : index
    %19 = vector.load %arg8[%c0_14, %c0_15] : memref<16x128xf32, #tpu.memory_space<vmem>>, vector<16x128xf32>
    tpu.vector_store %arg8[%c0_14, %c0_15], %13 {strides = array<i32>} : memref<16x128xf32, #tpu.memory_space<vmem>>, vector<16x128xf32>,
    return
  }
  func.func @transform_0(%arg0: i32, %arg1: i32) -> (i32, i32) {
    %c0_i32 = arith.constant 0 : i32
    %c0_i32_0 = arith.constant 0 : i32
    return %arg0, %c0_i32 : i32, i32
  }
  func.func @transform_1(%arg0: i32, %arg1: i32) -> (i32, i32) {
    %c0_i32 = arith.constant 0 : i32
    %c0_i32_0 = arith.constant 0 : i32
    return %c0_i32, %arg1 : i32, i32
  }
  func.func @transform_2(%arg0: i32, %arg1: i32) -> (i32, i32) {
    %c0_i32 = arith.constant 0 : i32
    %c0_i32_0 = arith.constant 0 : i32
    return %c0_i32, %arg1 : i32, i32
  }
  func.func @transform_3(%arg0: i32, %arg1: i32) -> (i32, i32) {
    %c0_i32 = arith.constant 0 : i32
    return %arg0, %arg1 : i32, i32
  }
  func.func @transform_4(%arg0: i32, %arg1: i32) -> (i32, i32) {
    %c0_i32 = arith.constant 0 : i32
    return %arg0, %arg1 : i32, i32
  }
  func.func @transform_5(%arg0: i32, %arg1: i32) -> (i32, i32) {
    %c0_i32 = arith.constant 0 : i32
    return %arg0, %arg1 : i32, i32
  }
  func.func @transform_6(%arg0: i32, %arg1: i32) -> (i32, i32) {
    %c0_i32 = arith.constant 0 : i32
    return %arg0, %arg1 : i32, i32
  }
}

</mosaic_0001>

<bundles_post_ra>
// kernel: lif_neurons_forward.1
= control target key start
LH: loop header
LB: loop body
LE: loop exit
PB: predicated region body
PF: predicated region fallthrough
CT: control target
= control target key end

     0   :  { %v304_v39 = vmov 0.0   ;;  %s421_s1 = inlined_call_operand.vmem [shape: bf16[256,128], index: 1, kind: input, shape index: {}]   ;;  %s422_s0 = inlined_call_operand.vmem [shape: bf16[16,256], index: 0, kind: input, shape index: {}]   ;;  %s423_s3 = inlined_call_operand.vmem [shape: f32[16,128], index: 3, kind: input, shape index: {}, may-alias: {3,5}]   ;;  %s424_s4 = inlined_call_operand.vmem [shape: f32[16,128], index: 4, kind: input, shape index: {}, may-alias: {4,6}]   ;;  %s425_s2 = inlined_call_operand.vmem [shape: f32[1,128], index: 2, kind: input, shape index: {}]   ;;  %s426_s6 = inlined_call_operand.vmem [shape: f32[16,128], index: 6, kind: output, shape index: {1}, may-alias: {4,6}]   ;;  %s427_s5 = inlined_call_operand.vmem [shape: f32[16,128], index: 5, kind: output, shape index: {0}, may-alias: {3,5}]  }
   0x1   :  { %v285_v0 = vld [vmem:[%s421_s1 + $0x40] sm:$0xff]   ;;  %v287_v2 = vld [vmem:[%s421_s1 + $0x48] sm:$0xff]   ;;  %v289_v4 = vld [vmem:[%s421_s1 + $0x50] sm:$0xff]  }
   0x2   :  { %v286_v1 = vld [vmem:[%s421_s1] sm:$0xff]   ;;  %262 = vmatprep.subr.bf16.mxu0 %v285_v0  ;;  %v288_v3 = vld [vmem:[%s421_s1 + $0x8] sm:$0xff]   ;;  %v290_v5 = vld [vmem:[%s421_s1 + $0x10] sm:$0xff]  }
   0x3   :  { %263 = vmatpush3.bf16.msra.mxu0 %v286_v1  ;;  %v291_v6 = vld [vmem:[%s421_s1 + $0x58] sm:$0xff]   ;;  %v293_v8 = vld [vmem:[%s421_s1 + $0x60] sm:$0xff]   ;;  %v295_v10 = vld [vmem:[%s421_s1 + $0x68] sm:$0xff]  }
   0x4   :  { %264 = vmatprep.subr.bf16.mxu0 %v287_v2  ;;  %v292_v7 = vld [vmem:[%s421_s1 + $0x18] sm:$0xff]   ;;  %v294_v9 = vld [vmem:[%s421_s1 + $0x20] sm:$0xff]   ;;  %v296_v12 = vld [vmem:[%s421_s1 + $0x28] sm:$0xff]  }
   0x5   :  { %v303_v11 = vld [vmem:[%s422_s0 + $0x4] ss:$8 sps:$4 sm:$0xff]   ;;  %v297_v13 = vld [vmem:[%s421_s1 + $0x70] sm:$0xff]   ;;  %v299_v15 = vld [vmem:[%s421_s1 + $0x78] sm:$0xff]  }
   0x6   :  { %202 = vmatprep.mubr.bf16.mxu0 %v303_v11  ;;  %v298_v14 = vld [vmem:[%s421_s1 + $0x30] sm:$0xff]   ;;  %v300_v16 = vld [vmem:[%s421_s1 + $0x38] sm:$0xff]   ;;  %v301_v17 = vld [vmem:[%s422_s0] ss:$8 sps:$4 sm:$0xff]  }
   0x7   :  { %265 = vmatpush3.bf16.msra.mxu0 %v288_v3  ;;  %v211_v18 = vld [vmem:[%s424_s4] sm:$0xff]  ;;  %v212_v20 = vld [vmem:[%s424_s4 + $0x8] sm:$0xff] }
   0x8   :  { %266 = vmatprep.subr.bf16.mxu0 %v289_v4  ;;  %v215_v19 = vld [vmem:[%s423_s3] sm:$0xff]  ;;  %v216_v21 = vld [vmem:[%s423_s3 + $0x8] sm:$0xff]  ;;  %v213_v22 = vmul.f32 0.5, %v211_v18  ;;  %v214_v25 = vmul.f32 0.5, %v212_v20 }
   0x9   :  { %v217_v23 = vsub.f32 1.0, %v215_v19  ;;  %v218_v26 = vsub.f32 1.0, %v216_v21  ;;  %v241_v27 = vld [vmem:[%s425_s2] ss:$0 sm:$0xff] }
   0xb   :  { %267 = vmatpush3.bf16.msra.mxu0 %v290_v5  ;;  %v219_v30 = vmul.f32 %v217_v23, %v213_v22  ;;  %v220_v35 = vmul.f32 %v218_v26, %v214_v25 }
   0xc   :  { %268 = vmatprep.subr.bf16.mxu0 %v291_v6 }
   0xf   :  { %269 = vmatpush3.bf16.msra.mxu0 %v292_v7 }
  0x10   :  { %270 = vmatprep.subr.bf16.mxu0 %v293_v8 }
  0x13   :  { %271 = vmatpush3.bf16.msra.mxu0 %v294_v9 }
  0x14   :  { %272 = vmatprep.subr.bf16.mxu0 %v295_v10 }
  0x17   :  { %273 = vmatpush3.bf16.msra.mxu0 %v296_v12 }
  0x18   :  { %274 = vmatprep.subr.bf16.mxu0 %v297_v13 }
  0x1b   :  { %275 = vmatpush3.bf16.msra.mxu0 %v298_v14 }
  0x1c   :  { %276 = vmatprep.subr.bf16.mxu0 %v299_v15 }
  0x1f   :  { %277 = vmatpush3.bf16.msra.mxu0 %v300_v16 }
  0x22   :  { %203 = vmatmul.mubr.bf16.vlgmr.msra.gmra.mrb[0].mxu0 %v301_v17 }
  0xf5   :  { %v278_v24 = vpop.f32.mrb[0].mxu0 }
  0xf6   :  { %v279_v28 = vpop.f32.mrb[1].mxu0 }
  0xf7   :  { %v280_v29 = vadd.f32 %v279_v28, %v278_v24  ;;  %v281_v31 = vpop.f32.mrb[2].mxu0 }
  0xf8   :  { %v282_v32 = vpop.f32.mrb[3].mxu0 }
  0xf9   :  { %v205_v33 = vadd.f32 %v280_v29, %v241_v27  ;;  %v283_v34 = vadd.f32 %v282_v32, %v281_v31 }
  0xfb   :  { %v221_v36 = vadd.f32 %v219_v30, %v205_v33  ;;  %v208_v37 = vadd.f32 %v283_v34, %v241_v27 }
  0xfd   :  { %vm223_vm0 = vcmp.gt.f32.partialorder %v221_v36, 0.5  ;;  %231 = vst [vmem:[%s426_s6] sm:$0xff] %v221_v36  ;;  %v222_v38 = vadd.f32 %v220_v35, %v208_v37 }
  0xfe   :  { %v260_v40 = vsel %vm223_vm0, 1.0, %v304_v39 }
  0xff   :  { %229 = vst [vmem:[%s427_s5] sm:$0xff] %v260_v40  ;;  %vm224_vm1 = vcmp.gt.f32.partialorder %v222_v38, 0.5  ;;  %232 = vst [vmem:[%s426_s6 + $0x8] sm:$0xff] %v222_v38 }
 0x100   :  { %v261_v41 = vsel %vm224_vm1, 1.0, %v304_v39 }
 0x101   :  { %230 = vst [vmem:[%s427_s5 + $0x8] sm:$0xff] %v261_v41 }

</bundles_post_ra>
